<compile_context>
chip_gen: v7x
topology: tpu7x:2x2x1
jax: 0.10.0
libtpu: 0.0.40
codegen_flags: <defaults>
</compile_context>

<pallas_src>
import numpy as np
import jax
import jax.numpy as jnp
from jax.experimental import pallas as pl
from jax.experimental.pallas import tpu as pltpu

# ----------------------------- config ---------------------------------------
DIM = 16            # sequence length ("dim" argument of the module)
KSIZE = 3           # kernel_size (odd, as asserted by the module)
CHANNELS = 4        # channels
DEPTH = 2           # depth -> DEPTH+1 conv layers total
PAD = KSIZE // 2    # circular padding used by every layer when dilated=False
OUT_CH = 2          # final conv always maps to 2 channels
MAX_TILE_B = 2048   # max batch tile on the lane axis (sweepable, multiple of 128)


def _round_up(n, m):
    return ((n + m - 1) // m) * m


# ------------------------- parameter setup (glue) ----------------------------
def _init_conv_params(key, out_ch, in_ch, ksize):
    """Deterministic Conv1d init (PyTorch-style uniform(-1/sqrt(fan_in), ...))."""
    bound = 1.0 / np.sqrt(in_ch * ksize)
    kw, kb = jax.random.split(key)
    w = jax.random.uniform(kw, (out_ch, in_ch, ksize), jnp.float32, -bound, bound)
    b = jax.random.uniform(kb, (out_ch,), jnp.float32, -bound, bound)
    return w, b


def _circulant_matrix(w, length, pad, dilation=1):
    """Dense matrix A (Cin*L, Cout*L) s.t. a circular-padded Conv1d equals
    y[b, co*L + tp] = sum_{ci,t} h[b, ci*L + t] * A[ci*L + t, co*L + tp]."""
    w = np.asarray(w)
    o, cin, k = w.shape
    a = np.zeros((cin * length, o * length), dtype=np.float32)
    for co in range(o):
        for ci in range(cin):
            for dk in range(k):
                for tp in range(length):
                    t = (tp + dk * dilation - pad) % length
                    a[ci * length + t, co * length + tp] += w[co, ci, dk]
    return jnp.asarray(a)
    # TODO(synk): dilated=True only changes this host-side construction
    #             (dilation/padding); the chosen config uses dilated=False.


# ------------------------------ Pallas kernel --------------------------------
def _make_kernel(n_layers):
    """refs = (x_t, A1^T, b1, A2^T, b2, ..., An^T, bn, out_t).

    Feature-major fused chain: h (C*L, TILE_B) bf16; per layer
    h = A^T @ h (f32 accum) + bias (lane-broadcast), ReLU (except last)."""
    def kernel(*refs):
        out_ref = refs[-1]
        h = refs[0][...]                                 # bf16 (DIM, TILE_B)
        for l in range(n_layers):
            a_ref = refs[1 + 2 * l]                      # bf16 (N_out, N_in)
            b_ref = refs[2 + 2 * l]                      # f32  (N_out, 1)
            h = jnp.dot(a_ref[...], h,
                        preferred_element_type=jnp.float32) + b_ref[...]
            if l < n_layers - 1:
                # ReLU in bf16 (packed VALU on v6e/v7x; cast is monotone so
                # cast-then-max == max-then-cast numerically).
                h = jnp.maximum(h.astype(jnp.bfloat16), 0.0)
        out_ref[...] = h.astype(out_ref.dtype)
    return kernel


def _choose_tile_b(batch, max_tile_b):
    """Pick (tile_b, padded_batch): lane-dense (multiple of 128), as large as
    possible up to max_tile_b, and an EVEN number of grid steps when tiled so
    both v7x TensorCores get equal work."""
    b128 = _round_up(max(batch, 1), 128)
    if b128 <= max_tile_b:
        return b128, b128                      # single grid step
    n_steps = -(-b128 // max_tile_b)
    if n_steps % 2:
        n_steps += 1                           # even split across 2 TCs (v7x)
    tile_b = _round_up(-(-b128 // n_steps), 128)
    return tile_b, tile_b * n_steps


def coupling_receptive_cnn(x, kern_params, *, tile_b=None, max_tile_b=MAX_TILE_B,
                           out_dtype=jnp.bfloat16, feature_major_out=False):
    """x: (B, DIM) float32.  Returns (B, 2*DIM) in `out_dtype` (bf16 default to
    halve the writeback DMA), matching the module's x.view(-1, 2*dim) output.
    Set feature_major_out=True to get (2*DIM, B) and skip the final transpose."""
    B = x.shape[0]
    n_layers = len(kern_params)
    in_rows = kern_params[0][0].shape[1]    # DIM
    out_rows = kern_params[-1][0].shape[0]  # 2*DIM

    if tile_b is None:
        tile_b, b_pad = _choose_tile_b(B, max_tile_b)
    else:
        assert tile_b % 128 == 0, "tile_b must be a multiple of 128 (lane-dense)"
        b_pad = _round_up(B, tile_b)

    # Single cast + transpose + pad relayout: batch lands on the lane axis.
    xt = jnp.pad(x.astype(jnp.bfloat16).T, ((0, 0), (0, b_pad - B)))

    flat_inputs = [xt]
    in_specs = [pl.BlockSpec((in_rows, tile_b), lambda i: (0, i))]
    for a_t, bias in kern_params:
        n_out = a_t.shape[0]
        flat_inputs += [a_t.astype(jnp.bfloat16), bias.astype(jnp.float32)]
        # Full-array blocks + constant index_maps -> weights and narrow biases
        # stay VMEM-resident across grid steps. (Legal only because block_shape
        # equals the full array shape; last dims 16/64/1 are not multiples of 128.)
        in_specs += [
            pl.BlockSpec(a_t.shape, lambda i: (0, 0)),
            pl.BlockSpec((n_out, 1), lambda i: (0, 0)),
        ]

    out_t = pl.pallas_call(
        _make_kernel(n_layers),
        out_shape=jax.ShapeDtypeStruct((out_rows, b_pad), out_dtype),
        grid=(b_pad // tile_b,),
        in_specs=in_specs,
        out_specs=pl.BlockSpec((out_rows, tile_b), lambda i: (0, i)),
        compiler_params=pltpu.CompilerParams(
            dimension_semantics=("parallel",),     # v7x: shard batch tiles over 2 TCs
            vmem_limit_bytes=32 * 1024 * 1024,     # explicit, with headroom on v7x/v5e
        ),
    )(*flat_inputs)

    if feature_major_out:
        return out_t[:, :B]        # (2*dim, B): skip the extra HBM transpose pass
    return out_t[:, :B].T          # module layout (B, 2*dim); drop batch padding


# --------------------------- pure-JAX reference ------------------------------
def _conv1d_circular_ref(h, w, b, pad):
    # h: (B, Cin, L), w: (O, Cin, K), b: (O,)  -- circular padded conv, stride 1
    k = w.shape[2]
    out = jnp.zeros((h.shape[0], w.shape[0], h.shape[2]), jnp.float32)
    for dk in range(k):
        shifted = jnp.roll(h, pad - dk, axis=2)  # shifted[..., t] = h[..., (t+dk-pad) % L]
        out = out + jnp.einsum("oc,bct->bot", w[:, :, dk], shifted)
    return out + b[None, :, None]


def reference_forward(x, raw_params):
    h = x[:, None, :]                              # unsqueeze(1) -> (B, 1, L)
    for li, (w, b) in enumerate(raw_params):
        h = _conv1d_circular_ref(h, w, b, PAD)
        if li < len(raw_params) - 1:
            h = jax.nn.relu(h)
    return h.reshape(h.shape[0], -1)               # view(-1, 2*dim)


# ---------------------------------- main -------------------------------------
if __name__ == "__main__":
    keys = jax.random.split(jax.random.PRNGKey(0), DEPTH + 2)

    # raw Conv1d parameters, exactly the shapes the module's __init__ creates
    raw_params = [_init_conv_params(keys[0], CHANNELS, 1, KSIZE)]
    for i in range(DEPTH - 1):
        raw_params.append(_init_conv_params(keys[1 + i], CHANNELS, CHANNELS, KSIZE))
    raw_params.append(_init_conv_params(keys[DEPTH], OUT_CH, CHANNELS, KSIZE))

    # kernel-side parameters: transposed circulant matrices (feature-major) in bf16
    # + length-repeated biases as narrow (O*L, 1) f32 columns (lane-broadcast in-kernel)
    kern_params = [
        (_circulant_matrix(w, DIM, PAD, dilation=1).T.astype(jnp.bfloat16),
         jnp.repeat(b, DIM)[:, None].astype(jnp.float32))
        for (w, b) in raw_params
    ]

    # --- small-shape run (module-consistent: batch=2, dim=16): one 128-wide tile ---
    batch = 2
    x = jax.random.normal(keys[-1], (batch, DIM), dtype=jnp.float32)
    out = jax.block_until_ready(coupling_receptive_cnn(x, kern_params))
    assert out.shape == (batch, 2 * DIM), out.shape
    ref = reference_forward(x, raw_params)
    # bf16 matmul inputs/output (f32 accumulation) -> looser tolerance than pure f32
    np.testing.assert_allclose(np.asarray(out).astype(np.float32),
                               np.asarray(ref), rtol=5e-2, atol=5e-2)

    # --- multi-tile run: exercises the batch grid axis with an EVEN step count
    #     (B=600 -> 4 tiles of 256: balanced across v7x's two TensorCores) ---
    big_b = 600
    xb = jax.random.normal(jax.random.PRNGKey(1), (big_b, DIM), dtype=jnp.float32)
    outb = jax.block_until_ready(
        coupling_receptive_cnn(xb, kern_params, max_tile_b=256))
    refb = reference_forward(xb, raw_params)
    np.testing.assert_allclose(np.asarray(outb).astype(np.float32),
                               np.asarray(refb), rtol=5e-2, atol=5e-2)

    print("KERNEL_OK")
</pallas_src>

<mosaic_0001>
module attributes {stable_mosaic.version = 11 : i64} {
  func.func @kernel(%arg0: i32, %arg1: memref<16x128xbf16, #tpu.memory_space<vmem>>, %arg2: memref<64x16xbf16, #tpu.memory_space<vmem>>, %arg3: memref<64x1xf32, #tpu.memory_space<vmem>>, %arg4: memref<64x64xbf16, #tpu.memory_space<vmem>>, %arg5: memref<64x1xf32, #tpu.memory_space<vmem>>, %arg6: memref<32x64xbf16, #tpu.memory_space<vmem>>, %arg7: memref<32x1xf32, #tpu.memory_space<vmem>>, %arg8: memref<32x128xbf16, #tpu.memory_space<vmem>>) attributes {dimension_semantics = [#tpu.dimension_semantics<parallel>], iteration_bounds = array<i64: 1>, scalar_prefetch = 0 : i64, scratch_operands = 0 : i64, tpu.core_type = #tpu.core_type<tc>, window_params = [{transform_indices = @transform_0, window_bounds = array<i64: 16, 128>}, {pipeline_mode = #tpu.pipeline_mode<synchronous>, transform_indices = @transform_1, window_bounds = array<i64: 64, 16>}, {pipeline_mode = #tpu.pipeline_mode<synchronous>, transform_indices = @transform_2, window_bounds = array<i64: 64, 1>}, {pipeline_mode = #tpu.pipeline_mode<synchronous>, transform_indices = @transform_3, window_bounds = array<i64: 64, 64>}, {pipeline_mode = #tpu.pipeline_mode<synchronous>, transform_indices = @transform_4, window_bounds = array<i64: 64, 1>}, {pipeline_mode = #tpu.pipeline_mode<synchronous>, transform_indices = @transform_5, window_bounds = array<i64: 32, 64>}, {pipeline_mode = #tpu.pipeline_mode<synchronous>, transform_indices = @transform_6, window_bounds = array<i64: 32, 1>}, {transform_indices = @transform_7, window_bounds = array<i64: 32, 128>}]} {
    %c0 = arith.constant 0 : index
    %c0_0 = arith.constant 0 : index
    %0 = vector.load %arg1[%c0, %c0_0] : memref<16x128xbf16, #tpu.memory_space<vmem>>, vector<16x128xbf16>
    %c0_1 = arith.constant 0 : index
    %c0_2 = arith.constant 0 : index
    %1 = vector.load %arg2[%c0_1, %c0_2] : memref<64x16xbf16, #tpu.memory_space<vmem>>, vector<64x16xbf16>
    %cst = arith.constant dense<0.000000e+00> : vector<64x128xf32>
    %2 = tpu.matmul %1, %0, %cst {dimension_numbers = #tpu.dot_dimension_numbers<[1], [0], [0], [1], [0, 0, 1, 1], [], []>} : vector<64x16xbf16>, vector<16x128xbf16>, vector<64x128xf32> -> vector<64x128xf32>
    %c0_3 = arith.constant 0 : index
    %c0_4 = arith.constant 0 : index
    %3 = vector.load %arg3[%c0_3, %c0_4] : memref<64x1xf32, #tpu.memory_space<vmem>>, vector<64x1xf32>
    %4 = vector.broadcast %3 : vector<64x1xf32> to vector<64x128xf32>
    %5 = arith.addf %2, %4 : vector<64x128xf32>
    %6 = arith.truncf %5 : vector<64x128xf32> to vector<64x128xbf16>
    %cst_5 = arith.constant 0.000000e+00 : bf16
    %7 = vector.broadcast %cst_5 : bf16 to vector<64x128xbf16>
    %8 = arith.maximumf %6, %7 : vector<64x128xbf16>
    %c0_6 = arith.constant 0 : index
    %c0_7 = arith.constant 0 : index
    %9 = vector.load %arg4[%c0_6, %c0_7] : memref<64x64xbf16, #tpu.memory_space<vmem>>, vector<64x64xbf16>
    %cst_8 = arith.constant dense<0.000000e+00> : vector<64x128xf32>
    %10 = tpu.matmul %9, %8, %cst_8 {dimension_numbers = #tpu.dot_dimension_numbers<[1], [0], [0], [1], [0, 0, 1, 1], [], []>} : vector<64x64xbf16>, vector<64x128xbf16>, vector<64x128xf32> -> vector<64x128xf32>
    %c0_9 = arith.constant 0 : index
    %c0_10 = arith.constant 0 : index
    %11 = vector.load %arg5[%c0_9, %c0_10] : memref<64x1xf32, #tpu.memory_space<vmem>>, vector<64x1xf32>
    %12 = vector.broadcast %11 : vector<64x1xf32> to vector<64x128xf32>
    %13 = arith.addf %10, %12 : vector<64x128xf32>
    %14 = arith.truncf %13 : vector<64x128xf32> to vector<64x128xbf16>
    %cst_11 = arith.constant 0.000000e+00 : bf16
    %15 = vector.broadcast %cst_11 : bf16 to vector<64x128xbf16>
    %16 = arith.maximumf %14, %15 : vector<64x128xbf16>
    %c0_12 = arith.constant 0 : index
    %c0_13 = arith.constant 0 : index
    %17 = vector.load %arg6[%c0_12, %c0_13] : memref<32x64xbf16, #tpu.memory_space<vmem>>, vector<32x64xbf16>
    %cst_14 = arith.constant dense<0.000000e+00> : vector<32x128xf32>
    %18 = tpu.matmul %17, %16, %cst_14 {dimension_numbers = #tpu.dot_dimension_numbers<[1], [0], [0], [1], [0, 0, 1, 1], [], []>} : vector<32x64xbf16>, vector<64x128xbf16>, vector<32x128xf32> -> vector<32x128xf32>
    %c0_15 = arith.constant 0 : index
    %c0_16 = arith.constant 0 : index
    %19 = vector.load %arg7[%c0_15, %c0_16] : memref<32x1xf32, #tpu.memory_space<vmem>>, vector<32x1xf32>
    %20 = vector.broadcast %19 : vector<32x1xf32> to vector<32x128xf32>
    %21 = arith.addf %18, %20 : vector<32x128xf32>
    %22 = arith.truncf %21 : vector<32x128xf32> to vector<32x128xbf16>
    %c0_17 = arith.constant 0 : index
    %c0_18 = arith.constant 0 : index
    %23 = vector.load %arg8[%c0_17, %c0_18] : memref<32x128xbf16, #tpu.memory_space<vmem>>, vector<32x128xbf16>
    tpu.vector_store %arg8[%c0_17, %c0_18], %22 {strides = array<i32>} : memref<32x128xbf16, #tpu.memory_space<vmem>>, vector<32x128xbf16>,
    return
  }
  func.func @transform_0(%arg0: i32) -> (i32, i32) {
    %c0_i32 = arith.constant 0 : i32
    %c0_i32_0 = arith.constant 0 : i32
    return %c0_i32, %arg0 : i32, i32
  }
  func.func @transform_1(%arg0: i32) -> (i32, i32) {
    %c0_i32 = arith.constant 0 : i32
    %c0_i32_0 = arith.constant 0 : i32
    %c0_i32_1 = arith.constant 0 : i32
    return %c0_i32, %c0_i32_0 : i32, i32
  }
  func.func @transform_2(%arg0: i32) -> (i32, i32) {
    %c0_i32 = arith.constant 0 : i32
    %c0_i32_0 = arith.constant 0 : i32
    %c0_i32_1 = arith.constant 0 : i32
    return %c0_i32, %c0_i32_0 : i32, i32
  }
  func.func @transform_3(%arg0: i32) -> (i32, i32) {
    %c0_i32 = arith.constant 0 : i32
    %c0_i32_0 = arith.constant 0 : i32
    %c0_i32_1 = arith.constant 0 : i32
    return %c0_i32, %c0_i32_0 : i32, i32
  }
  func.func @transform_4(%arg0: i32) -> (i32, i32) {
    %c0_i32 = arith.constant 0 : i32
    %c0_i32_0 = arith.constant 0 : i32
    %c0_i32_1 = arith.constant 0 : i32
    return %c0_i32, %c0_i32_0 : i32, i32
  }
  func.func @transform_5(%arg0: i32) -> (i32, i32) {
    %c0_i32 = arith.constant 0 : i32
    %c0_i32_0 = arith.constant 0 : i32
    %c0_i32_1 = arith.constant 0 : i32
    return %c0_i32, %c0_i32_0 : i32, i32
  }
  func.func @transform_6(%arg0: i32) -> (i32, i32) {
    %c0_i32 = arith.constant 0 : i32
    %c0_i32_0 = arith.constant 0 : i32
    %c0_i32_1 = arith.constant 0 : i32
    return %c0_i32, %c0_i32_0 : i32, i32
  }
  func.func @transform_7(%arg0: i32) -> (i32, i32) {
    %c0_i32 = arith.constant 0 : i32
    %c0_i32_0 = arith.constant 0 : i32
    return %c0_i32, %arg0 : i32, i32
  }
}

</mosaic_0001>

<bundles_post_ra>
// kernel: tpu_custom_call.1
= control target key start
LH: loop header
LB: loop body
LE: loop exit
PB: predicated region body
PF: predicated region fallthrough
CT: control target
= control target key end

     0   :  { %vm112_vm0 = vcmask 130048   ;;  %v627_v3 = vmov 0   ;;  %s796_s0 = inlined_call_operand.vmem [shape: bf16[16,128], index: 0, kind: input, shape index: {}]   ;;  %s797_s1 = inlined_call_operand.vmem [shape: bf16[64,16], index: 1, kind: input, shape index: {}]   ;;  %s798_s2 = inlined_call_operand.vmem [shape: f32[64,1], index: 2, kind: input, shape index: {}]   ;;  %s799_s3 = inlined_call_operand.vmem [shape: bf16[64,64], index: 3, kind: input, shape index: {}]   ;;  %s800_s4 = inlined_call_operand.vmem [shape: f32[64,1], index: 4, kind: input, shape index: {}]   ;;  %s801_s5 = inlined_call_operand.vmem [shape: bf16[32,64], index: 5, kind: input, shape index: {}]   ;;  %s802_s6 = inlined_call_operand.vmem [shape: f32[32,1], index: 6, kind: input, shape index: {}]   ;;  %s803_s7 = inlined_call_operand.hbm [shape: bf16[32,128], index: 7, kind: output, shape index: {}]  }
   0x1   :  { %v592_v0 = vld [vmem:[%s796_s0] sm:$0xff]   ;;  %v594_v2 = vld [vmem:[%s797_s1 + $0x8] sm:$0xff]   ;;  %590 = vset.pattern.permute.xlu0 %v627_v3  ;;  %v595_v4 = vld [vmem:[%s797_s1 + $0x10] sm:$0xff]   ;;  %591 = vset.pattern.permute.xlu1 %v627_v3 }
   0x2   :  { %v593_v1 = vld [vmem:[%s797_s1] sm:$0xff]   ;;  %548 = vmatprep.subr.bf16.mxu0 %v592_v0  ;;  %v40_v6 = vld [vmem:[%s798_s2 + $0x10] sm:$0xff]  ;;  %v39_v7 = vld [vmem:[%s798_s2 + $0x8] sm:$0xff] }
   0x3   :  { %549 = vmatpush3.bf16.msra.mxu0 %v592_v0  ;;  %550 = vmatprep.mubr.msk.bf16.mxu0 %vm112_vm0, %v593_v1  ;;  %v38_v5 = vld [vmem:[%s798_s2] sm:$0xff]  ;;  %v41_v8 = vld [vmem:[%s798_s2 + $0x18] sm:$0xff]  ;;  %v43_v11 = vld [vmem:[%s798_s2 + $0x28] sm:$0xff] }
   0x4   :  { %48 = vperm.xlu0 %590, %v38_v5   ;;  %58 = vperm.xlu1 %591, %v40_v6   ;;  %v596_v9 = vld [vmem:[%s797_s1 + $0x18] sm:$0xff]   ;;  %v42_v10 = vld [vmem:[%s798_s2 + $0x20] sm:$0xff]  ;;  %v44_v12 = vld [vmem:[%s798_s2 + $0x30] sm:$0xff] }
   0x6   :  { %551 = vmatmul.mubr.msk.bf16.vlgmr.msra.gmra.mrb[0].mxu0 %vm112_vm0, %v594_v2 }
   0x7   :  { %554 = vmatprep.mubr.msk.bf16.mxu0 %vm112_vm0, %v595_v4 }
   0x8   :  { %53 = vperm.xlu0 %590, %v39_v7   ;;  %63 = vperm.xlu1 %591, %v41_v8  }
   0xc   :  { %68 = vperm.xlu0 %590, %v42_v10   ;;  %73 = vperm.xlu1 %591, %v43_v11  }
   0xe   :  { %555 = vmatmul.mubr.msk.bf16.gmra.mrb[4].mxu0 %vm112_vm0, %v596_v9 }
   0xf   :  { %12 = vsyncpa [#allocation3], 0  ;;  %v45_v13 = vld [vmem:[%s798_s2 + $0x38] sm:$0xff]  ;;  %v206_v14 = vld [vmem:[%s800_s4] sm:$0xff]  ;;  %vm274_vm1 = vcmask 523264   ;;  %s628_s0 = smov [#allocation2]  }
  0x10   :  { %78 = vperm.xlu0 %590, %v44_v12   ;;  %83 = vperm.xlu1 %591, %v45_v13   ;;  %v207_v15 = vld [vmem:[%s800_s4 + $0x8] sm:$0xff]  ;;  %v208_v16 = vld [vmem:[%s800_s4 + $0x10] sm:$0xff]  ;;  %v209_v17 = vld [vmem:[%s800_s4 + $0x18] sm:$0xff]  ;;  %s478_s2 = sshll.u32 %s628_s0, 4  ;;  %s479_s2 = int_to_ptr.vmem [resolvable:$true] %s478_s2 }
  0x11   :  { %v210_v18 = vld [vmem:[%s800_s4 + $0x20] sm:$0xff]  ;;  %v211_v19 = vld [vmem:[%s800_s4 + $0x28] sm:$0xff]  ;;  %v212_v20 = vld [vmem:[%s800_s4 + $0x30] sm:$0xff]  ;;  %p608_p1 = scmp.lt.s32.totalorder %s479_s2, %s479_s2 }
  0x12   :  { %v213_v21 = vld [vmem:[%s800_s4 + $0x38] sm:$0xff]  ;;  %v364_v22 = vld [vmem:[%s802_s6] sm:$0xff]  ;;  %v365_v23 = vld [vmem:[%s802_s6 + $0x8] sm:$0xff] }
  0x13   :  { %v366_v24 = vld [vmem:[%s802_s6 + $0x10] sm:$0xff]  ;;  %v367_v25 = vld [vmem:[%s802_s6 + $0x18] sm:$0xff]  ;;  %v597_v26 = vld [vmem:[%s799_s3] sm:$0xff]  }
  0x14   :  { %216 = vperm.xlu0 %590, %v206_v14   ;;  %221 = vperm.xlu1 %591, %v207_v15   ;;  %v598_v59 = vld [vmem:[%s799_s3 + $0x8] sm:$0xff]   ;;  %v599_v60 = vld [vmem:[%s799_s3 + $0x10] sm:$0xff]   ;;  %v600_v61 = vld [vmem:[%s799_s3 + $0x18] sm:$0xff]  }
  0x15   :  { %566 = vmatprep.mubr.msk.bf16.mxu1 %vm274_vm1, %v597_v26  ;;  %v601_v62 = vld [vmem:[%s801_s5] sm:$0xff]  }
  0x16   :  { %582 = vmatprep.mubr.msk.bf16.mxu0 %vm274_vm1, %v601_v62 }
  0x18   :  { %226 = vperm.xlu0 %590, %v208_v16   ;;  %231 = vperm.xlu1 %591, %v209_v17  }
  0x1c   :  { %236 = vperm.xlu0 %590, %v210_v18   ;;  %241 = vperm.xlu1 %591, %v211_v19  }
  0x20   :  { %246 = vperm.xlu0 %590, %v212_v20   ;;  %251 = vperm.xlu1 %591, %v213_v21  }
  0x24   :  { %370 = vperm.xlu0 %590, %v364_v22   ;;  %375 = vperm.xlu1 %591, %v365_v23  }
  0x28   :  { %380 = vperm.xlu0 %590, %v366_v24   ;;  %385 = vperm.xlu1 %591, %v367_v25  }
  0x83   :  { %v49_v27 = vpop.permute.xlu0 %48  ;;  %v59_v28 = vpop.permute.xlu1 %58 }
  0x87   :  { %v54_v29 = vpop.permute.xlu0 %53  ;;  %v64_v30 = vpop.permute.xlu1 %63 }
  0x8b   :  { %v69_v34 = vpop.permute.xlu0 %68  ;;  %v74_v38 = vpop.permute.xlu1 %73 }
  0x8f   :  { %v79_v45 = vpop.permute.xlu0 %78  ;;  %v84_v47 = vpop.permute.xlu1 %83 }
  0x93   :  { %v217_v63 = vpop.permute.xlu0 %216  ;;  %v222_v0 = vpop.permute.xlu1 %221 }
  0x97   :  { %v227_v1 = vpop.permute.xlu0 %226  ;;  %v232_v2 = vpop.permute.xlu1 %231 }
  0x9b   :  { %v237_v7 = vpop.permute.xlu0 %236  ;;  %v242_v11 = vpop.permute.xlu1 %241 }
  0x9f   :  { %v247_v18 = vpop.permute.xlu0 %246  ;;  %v252_v20 = vpop.permute.xlu1 %251 }
  0xd9   :  { %v552_v31 = vpop.f32.mrb[0].mxu0 }
  0xda   :  { %v159_v32 = vpop.f32.mrb[1].mxu0  ;;  %v168_v35 = vadd.f32 %v552_v31, %v59_v28 }
  0xdb   :  { %v553_v33 = vpop.f32.mrb[2].mxu0  ;;  %v160_v39 = vadd.f32 %v159_v32, %v49_v27  ;;  %v602_v32 = vld [vmem:[%s801_s5 + $0x8] sm:$0xff]   ;;  %s603_s5 = scalar_lea.vmem %s479_s2, 256 }
  0xdc   :  { %v171_v36 = vadd.f32 %v553_v33, %v64_v30  ;;  %v162_v37 = vpop.f32.mrb[3].mxu0  ;;  %v371_v33 = vpop.permute.xlu0 %370  ;;  %p604_p0 = scmp.ne.s32.totalorder %s479_s2, %s603_s5  ;;  %p609_p2 = scmp.lt.s32.totalorder %s603_s5, %s603_s5 }
  0xdd   :  { %v163_v40 = vadd.f32 %v162_v37, %v54_v29 }
  0xde   :  { %v191_v41 = vpack.c.bf16 %v171_v36, %v168_v35  ;;  %p610_p3 = por %p609_p2, %p608_p1 }
  0xdf   :  { %v190_v42 = vpack.c.bf16 %v163_v40, %v160_v39 }
  0xe0   :  { %v195_v49 = vmax.bf16 %v627_v3, %v191_v41  ;;  %v381_v36 = vpop.permute.xlu0 %380  ;;  %p611_p4 = pnand %p610_p3, %p604_p0 }
  0xe1   :  { %v556_v43 = vpop.f32.mrb[4].mxu0  ;;  %v194_v44 = vmax.bf16 %v627_v3, %v190_v42 }
  0xe2   :  { %v175_v46 = vpop.f32.mrb[5].mxu0  ;;  %v184_v50 = vadd.f32 %v556_v43, %v79_v45 }
  0xe3   :  { %v557_v48 = vpop.f32.mrb[6].mxu0  ;;  %558 = vmatprep.subr.bf16.mxu1 %v194_v44  ;;  %v176_v53 = vadd.f32 %v175_v46, %v69_v34  ;;  %v376_v34 = vpop.permute.xlu1 %375 }
  0xe4   :  { %v187_v51 = vadd.f32 %v557_v48, %v84_v47  ;;  %v178_v52 = vpop.f32.mrb[7].mxu0  ;;  %559 = vmatpush3.bf16.msra.mxu1 %v194_v44 }
  0xe5   :  { %v179_v54 = vadd.f32 %v178_v52, %v74_v38  ;;  %560 = vmatprep.subr.bf16.mxu1 %v195_v49 }
  0xe6   :  { %v193_v55 = vpack.c.bf16 %v187_v51, %v184_v50 }
  0xe7   :  { %v192_v56 = vpack.c.bf16 %v179_v54, %v176_v53  ;;  %v386_v38 = vpop.permute.xlu1 %385 }
  0xe8   :  { %561 = vmatpush3.bf16.msra.mxu1 %v195_v49  ;;  %v197_v58 = vmax.bf16 %v627_v3, %v193_v55 }
  0xe9   :  { %v196_v57 = vmax.bf16 %v627_v3, %v192_v56 }
  0xeb   :  { %562 = vmatprep.subr.bf16.mxu1 %v196_v57 }
  0xec   :  { %563 = vmatpush3.bf16.msra.mxu1 %v196_v57 }
  0xed   :  { %564 = vmatprep.subr.bf16.mxu1 %v197_v58 }
  0xf0   :  { %565 = vmatpush3.bf16.msra.mxu1 %v197_v58 }
  0xf3   :  { %567 = vmatmul.mubr.msk.bf16.vlgmr.msra.gmra.mrb[0].mxu1 %vm274_vm1, %v598_v59 }
  0xf4   :  { %570 = vmatprep.mubr.msk.bf16.mxu1 %vm274_vm1, %v599_v60 }
  0xfb   :  { %571 = vmatmul.mubr.msk.bf16.gmra.mrb[4].mxu1 %vm274_vm1, %v600_v61 }
 0x1c6   :  { %v568_v4 = vpop.f32.mrb[0].mxu1 }
 0x1c7   :  { %v321_v5 = vpop.f32.mrb[1].mxu1  ;;  %v330_v8 = vadd.f32 %v568_v4, %v227_v1 }
 0x1c8   :  { %v569_v6 = vpop.f32.mrb[2].mxu1  ;;  %v322_v12 = vadd.f32 %v321_v5, %v217_v63 }
 0x1c9   :  { %v333_v9 = vadd.f32 %v569_v6, %v232_v2  ;;  %v324_v10 = vpop.f32.mrb[3].mxu1 }
 0x1ca   :  { %v325_v13 = vadd.f32 %v324_v10, %v222_v0 }
 0x1cb   :  { %v353_v14 = vpack.c.bf16 %v333_v9, %v330_v8 }
 0x1cc   :  { %v352_v15 = vpack.c.bf16 %v325_v13, %v322_v12 }
 0x1cd   :  { %v357_v22 = vmax.bf16 %v627_v3, %v353_v14 }
 0x1ce   :  { %v572_v16 = vpop.f32.mrb[4].mxu1  ;;  %v356_v17 = vmax.bf16 %v627_v3, %v352_v15 }
 0x1cf   :  { %v337_v19 = vpop.f32.mrb[5].mxu1  ;;  %v346_v23 = vadd.f32 %v572_v16, %v247_v18 }
 0x1d0   :  { %v573_v21 = vpop.f32.mrb[6].mxu1  ;;  %574 = vmatprep.subr.bf16.mxu0 %v356_v17  ;;  %v338_v26 = vadd.f32 %v337_v19, %v237_v7 }
 0x1d1   :  { %v349_v24 = vadd.f32 %v573_v21, %v252_v20  ;;  %v340_v25 = vpop.f32.mrb[7].mxu1  ;;  %575 = vmatpush3.bf16.msra.mxu0 %v356_v17 }
 0x1d2   :  { %v341_v27 = vadd.f32 %v340_v25, %v242_v11  ;;  %576 = vmatprep.subr.bf16.mxu0 %v357_v22 }
 0x1d3   :  { %v355_v28 = vpack.c.bf16 %v349_v24, %v346_v23 }
 0x1d4   :  { %v354_v29 = vpack.c.bf16 %v341_v27, %v338_v26 }
 0x1d5   :  { %577 = vmatpush3.bf16.msra.mxu0 %v357_v22  ;;  %v359_v31 = vmax.bf16 %v627_v3, %v355_v28 }
 0x1d6   :  { %v358_v30 = vmax.bf16 %v627_v3, %v354_v29 }
 0x1d8   :  { %578 = vmatprep.subr.bf16.mxu0 %v358_v30 }
 0x1d9   :  { %579 = vmatpush3.bf16.msra.mxu0 %v358_v30 }
 0x1da   :  { %580 = vmatprep.subr.bf16.mxu0 %v359_v31 }
 0x1dd   :  { %581 = vmatpush3.bf16.msra.mxu0 %v359_v31 }
 0x1e0   :  { %583 = vmatmul.mubr.msk.bf16.vlgmr.msra.gmra.mrb[8].mxu0 %vm274_vm1, %v602_v32 }
 0x2b3   :  { %v584_v35 = vpop.f32.mrb[8].mxu0 }
 0x2b4   :  { %v438_v37 = vpop.f32.mrb[9].mxu0  ;;  %v447_v40 = vadd.f32 %v584_v35, %v381_v36 }
 0x2b5   :  { %v585_v39 = vpop.f32.mrb[10].mxu0  ;;  %v439_v42 = vadd.f32 %v438_v37, %v371_v33 }
 0x2b6   :  { %v450_v3 = vadd.f32 %v585_v39, %v386_v38  ;;  %v441_v41 = vpop.f32.mrb[11].mxu0 }
 0x2b7   :  { %v442_v43 = vadd.f32 %v441_v41, %v376_v34 }
 0x2b8   :  { %v526_v44 = vpack.c.bf16 %v450_v3, %v447_v40 }
 0x2b9   :  { %v521_v45 = vpack.c.bf16 %v442_v43, %v439_v42 }
 0x2ba   :  { %528 = vst [vmem:[#allocation2 + $0x8] sm:$0xff] %v526_v44  }
 0x2bb   :  { %522 = vst [vmem:[#allocation2] sm:$0xff] %v521_v45  }
 0x2bc   :  { %614 = shalt.err (!%p611_p4)
}
 0x2bd   :  { %s615_s11 = scalar_lea.hbm %s803_s7, 256 }
 0x2be   :  { %p616_p5 = scmp.ne.s32.totalorder %s803_s7, %s615_s11  ;;  %p619_p6 = scmp.lt.u32.totalorder %s615_s11, %s803_s7 }
 0x2c0   :  { %p621_p7 = pnand %p619_p6, %p616_p5 }
 0x2c2   :  { %624 = shalt.err (!%p621_p7)
}
 0x2c3   :  { %s629_s16 = smov 64   ;;  %s630_s17 = smov 4  }
 0x2c4   :  { %484 = dma.vmem_to_hbm [thread:$0]  %s479_s2, 256, %s803_s7, [#allocation3], %s629_s16, %s629_s16, %s630_s17  }
 0x2c5   :  { %625 = dma.done.wait [#allocation3], 256  }
 0x2c6   :  { %626 = vsyncadd [#allocation3], 4294967040 }
 0x2c7   :  { %488 = vsyncpa [#allocation3], 1 }

</bundles_post_ra>
